<compile_context>
chip_gen: v7x
topology: tpu7x:2x2x1
jax: 0.10.0
libtpu: 0.0.40
codegen_flags: <defaults>
</compile_context>

<pallas_src>
import functools

import jax
import jax.numpy as jnp
from jax.experimental import pallas as pl
from jax.experimental.pallas import tpu as pltpu


def _round_up(x: int, m: int) -> int:
    return ((x + m - 1) // m) * m


def _mlp_fused_kernel(x_ref, b_all_ref, *refs, n_layers: int, compute_dtype):
    """Fused MLP forward for one batch tile.

    x_ref    : (tm, feat)            f32 activations (batch tile, true K)
    b_all_ref: (n_layers, max_out)   f32 bias rows (padded lanes are zero)
    refs[:n] : (k_i, n_i)            bf16 pre-transposed weights
    refs[n]  : (tm, output_size)     f32 output tile (true N)
    Intermediates never leave VMEM/vregs; ReLU on every layer but the last.
    """
    w_refs = refs[:n_layers]
    o_ref = refs[n_layers]

    h = x_ref[...]                                        # f32 tile
    for i in range(n_layers):
        w = w_refs[i][...]                                # (k_i, n_i) bf16
        n_out = w.shape[1]
        h = jnp.dot(h.astype(compute_dtype), w,           # bf16 x bf16 -> f32 acc (MXU)
                    preferred_element_type=jnp.float32)
        h = h + b_all_ref[i:i + 1, :][:, :n_out]          # f32 bias epilogue
        if i < n_layers - 1:
            h = jnp.maximum(h, 0.0)                       # ReLU (f32, VPU)
    o_ref[...] = h.astype(o_ref.dtype)


def init_mlp_params(key, input_size, hidden_sizes, output_size):
    """Deterministic init mirroring nn.Linear's U(-1/sqrt(fan_in), 1/sqrt(fan_in)).

    Weights stored in PyTorch convention (out, in); `prepare_params` transposes,
    pads and casts them once.
    """
    sizes = [input_size] + list(hidden_sizes) + [output_size]
    params = []
    for i in range(len(sizes) - 1):
        fan_in, fan_out = sizes[i], sizes[i + 1]
        key, kw, kb = jax.random.split(key, 3)
        bound = 1.0 / jnp.sqrt(jnp.float32(fan_in))
        w = jax.random.uniform(kw, (fan_out, fan_in), jnp.float32, -bound, bound)
        b = jax.random.uniform(kb, (fan_out,), jnp.float32, -bound, bound)
        params.append((w, b))
    return params


def prepare_params(params, *, lane_pad=128, compute_dtype=jnp.bfloat16):
    """One-time prep (outside the hot path).

    Returns (weights, bias_all, layer_dims):
      weights   : list of (k_i, n_i) compute_dtype arrays, transposed to (in, out).
                  Layer 0 keeps the true K (matches the unpadded x); layers > 0
                  pad K to lane_pad (matches the previous layer's padded output);
                  hidden N is padded to lane_pad, final N stays the true
                  output_size.  All padding is zero => math stays exact.
      bias_all  : (n_layers, max_out) f32, one row per layer (zero-padded lanes).
      layer_dims: tuple of true (in_features, out_features) per layer.
    """
    n = len(params)
    layer_dims = tuple((w.shape[1], w.shape[0]) for w, _ in params)
    weights = []
    out_widths = []
    for i, (w, _) in enumerate(params):
        out_f, in_f = w.shape
        k_dim = in_f if i == 0 else _round_up(in_f, lane_pad)
        n_dim = out_f if i == n - 1 else _round_up(out_f, lane_pad)
        w_t = (jnp.zeros((k_dim, n_dim), compute_dtype)
               .at[:in_f, :out_f].set(w.T.astype(compute_dtype)))
        weights.append(w_t)
        out_widths.append(n_dim)
    max_out = max(out_widths)
    bias_all = jnp.zeros((n, max_out), jnp.float32)
    for i, (_, b) in enumerate(params):
        bias_all = bias_all.at[i, : b.shape[0]].set(b.astype(jnp.float32))
    return weights, bias_all, layer_dims


def _pick_tile_m(B: int, tile_m_max: int) -> int:
    """Batch tile: >=2 grid steps when possible (v7x 2 TCs), big tiles for big B."""
    if B < 8:
        return B                                   # full-extent block, grid = 1
    return max(8, min(tile_m_max, _round_up((B + 1) // 2, 8)))


def mlp_forward_fused(x, weights, bias_all, *, layer_dims, tile_m_max=512,
                      compute_dtype=jnp.bfloat16):
    """Forward pass matching MLP.forward: flatten, linears, ReLU except last."""
    B = x.shape[0]
    h = x.reshape(B, -1)                           # x.view(x.size(0), -1): free reshape
    feat = h.shape[1]
    n_layers = len(weights)
    out_size = weights[-1].shape[1]

    # Exact structural checks (true dims, not padded ones).
    assert feat == layer_dims[0][0] == weights[0].shape[0], (
        "flattened input features must equal layer-0 in_features")
    assert out_size == layer_dims[-1][1]

    tm = _pick_tile_m(B, tile_m_max)
    grid = (pl.cdiv(B, tm),)

    # VMEM footprint: weights/bias single-buffered (Buffered(1)), x/out tiles
    # double-buffered, plus the widest live f32 activation tile.
    itemsize = x.dtype.itemsize
    vmem_est = (sum(w.size * w.dtype.itemsize for w in weights)
                + bias_all.size * bias_all.dtype.itemsize
                + 2 * tm * feat * itemsize
                + 2 * tm * out_size * itemsize
                + tm * max(w.shape[1] for w in weights) * 4)
    assert vmem_est < 32 * 1024 * 1024, (
        f"MLP weights + tiles (~{vmem_est} B) exceed the default scoped VMEM; "
        "tile the feature dims instead of keeping whole weights resident")
    # TODO(synk): for layer widths that exceed scoped VMEM, switch to an
    # (m, n, k) tiled grid with a VMEM accumulator instead of whole-weight residency.

    in_specs = [
        pl.BlockSpec((tm, feat), lambda i: (i, 0)),
        pl.BlockSpec(bias_all.shape, lambda i: (0, 0),
                     pipeline_mode=pl.Buffered(1)),
    ]
    for w in weights:
        in_specs.append(pl.BlockSpec(w.shape, lambda i: (0, 0),
                                     pipeline_mode=pl.Buffered(1)))

    # Cost estimate on TRUE dims (advisory for XLA scheduling).
    flops = sum(2 * B * in_f * out_f for in_f, out_f in layer_dims)
    bytes_accessed = (h.size * itemsize
                      + sum(in_f * out_f for in_f, out_f in layer_dims)
                      * jnp.dtype(compute_dtype).itemsize
                      + sum(out_f for _, out_f in layer_dims) * 4
                      + B * out_size * itemsize)

    kernel = functools.partial(_mlp_fused_kernel, n_layers=n_layers,
                               compute_dtype=compute_dtype)
    return pl.pallas_call(
        kernel,
        out_shape=jax.ShapeDtypeStruct((B, out_size), x.dtype),
        grid=grid,
        in_specs=in_specs,
        out_specs=pl.BlockSpec((tm, out_size), lambda i: (i, 0)),
        compiler_params=pltpu.CompilerParams(
            dimension_semantics=("parallel",),      # batch tiles shard across TCs (v7x)
        ),
        cost_estimate=pl.CostEstimate(
            flops=flops, transcendentals=0, bytes_accessed=bytes_accessed),
    )(h, bias_all, *weights)


def mlp_reference(x, params, compute_dtype=jnp.float32):
    """Pure-JAX reference (torch-layout params). compute_dtype emulates operand cast."""
    B = x.shape[0]
    h = x.reshape(B, -1)
    n_layers = len(params)
    for i, (w, b) in enumerate(params):
        h = jnp.dot(h.astype(compute_dtype), w.T.astype(compute_dtype),
                    preferred_element_type=jnp.float32) + b.astype(jnp.float32)
        if i < n_layers - 1:
            h = jnp.maximum(h, 0.0)
    return h


if __name__ == "__main__":
    key = jax.random.PRNGKey(0)
    k_x, k_p = jax.random.split(key)

    # Small shapes consistent with the module: input (B, C, H, W) flattened.
    B, C, H, W = 2, 4, 4, 4
    input_size = C * H * W          # 64
    hidden_sizes = [32, 32]
    output_size = 8

    x = jax.random.normal(k_x, (B, C, H, W), jnp.float32)
    params = init_mlp_params(k_p, input_size, hidden_sizes, output_size)
    # One-time prep: transpose, pad, cast to bf16 (outside the hot path).
    weights, bias_all, layer_dims = prepare_params(params)

    fwd = jax.jit(functools.partial(mlp_forward_fused, layer_dims=layer_dims))
    out = fwd(x, weights, bias_all)
    out = jax.block_until_ready(out)

    assert out.shape == (B, output_size)
    # Numerics-matched reference (bf16 operands, f32 accumulation).
    ref_bf16 = mlp_reference(x, params, compute_dtype=jnp.bfloat16)
    assert jnp.allclose(out, ref_bf16, atol=1e-3, rtol=1e-3)
    # Full-f32 reference: bounds total bf16 drift.
    ref_f32 = mlp_reference(x, params)
    assert jnp.allclose(out, ref_f32, atol=5e-2, rtol=5e-2)

    print("KERNEL_OK")
</pallas_src>

<mosaic_0001>
module attributes {stable_mosaic.version = 11 : i64} {
  func.func @_mlp_fused_kernel(%arg0: i32, %arg1: memref<2x64xf32, #tpu.memory_space<vmem>>, %arg2: memref<3x128xf32, #tpu.memory_space<vmem>>, %arg3: memref<64x128xbf16, #tpu.memory_space<vmem>>, %arg4: memref<128x128xbf16, #tpu.memory_space<vmem>>, %arg5: memref<128x8xbf16, #tpu.memory_space<vmem>>, %arg6: memref<2x8xf32, #tpu.memory_space<vmem>>) attributes {dimension_semantics = [#tpu.dimension_semantics<parallel>], iteration_bounds = array<i64: 1>, scalar_prefetch = 0 : i64, scratch_operands = 0 : i64, tpu.core_type = #tpu.core_type<tc>, window_params = [{transform_indices = @transform_0, window_bounds = array<i64: 2, 64>}, {pipeline_mode = #tpu.pipeline_mode<synchronous>, transform_indices = @transform_1, window_bounds = array<i64: 3, 128>}, {pipeline_mode = #tpu.pipeline_mode<synchronous>, transform_indices = @transform_2, window_bounds = array<i64: 64, 128>}, {pipeline_mode = #tpu.pipeline_mode<synchronous>, transform_indices = @transform_3, window_bounds = array<i64: 128, 128>}, {pipeline_mode = #tpu.pipeline_mode<synchronous>, transform_indices = @transform_4, window_bounds = array<i64: 128, 8>}, {transform_indices = @transform_5, window_bounds = array<i64: 2, 8>}]} {
    %c0 = arith.constant 0 : index
    %c0_0 = arith.constant 0 : index
    %0 = vector.load %arg1[%c0, %c0_0] : memref<2x64xf32, #tpu.memory_space<vmem>>, vector<2x64xf32>
    %c0_1 = arith.constant 0 : index
    %c0_2 = arith.constant 0 : index
    %1 = vector.load %arg3[%c0_1, %c0_2] : memref<64x128xbf16, #tpu.memory_space<vmem>>, vector<64x128xbf16>
    %2 = arith.truncf %0 : vector<2x64xf32> to vector<2x64xbf16>
    %cst = arith.constant dense<0.000000e+00> : vector<2x128xf32>
    %3 = tpu.matmul %2, %1, %cst {dimension_numbers = #tpu.dot_dimension_numbers<[1], [0], [0], [1], [0, 0, 1, 1], [], []>} : vector<2x64xbf16>, vector<64x128xbf16>, vector<2x128xf32> -> vector<2x128xf32>
    %c0_3 = arith.constant 0 : index
    %c0_4 = arith.constant 0 : index
    %4 = vector.load %arg2[%c0_3, %c0_4] : memref<3x128xf32, #tpu.memory_space<vmem>>, vector<1x128xf32>
    %5 = vector.broadcast %4 : vector<1x128xf32> to vector<2x128xf32>
    %6 = arith.addf %3, %5 : vector<2x128xf32>
    %cst_5 = arith.constant 0.000000e+00 : f32
    %7 = vector.broadcast %cst_5 : f32 to vector<2x128xf32>
    %8 = arith.maximumf %6, %7 : vector<2x128xf32>
    %c0_6 = arith.constant 0 : index
    %c0_7 = arith.constant 0 : index
    %9 = vector.load %arg4[%c0_6, %c0_7] : memref<128x128xbf16, #tpu.memory_space<vmem>>, vector<128x128xbf16>
    %10 = arith.truncf %8 : vector<2x128xf32> to vector<2x128xbf16>
    %cst_8 = arith.constant dense<0.000000e+00> : vector<2x128xf32>
    %11 = tpu.matmul %10, %9, %cst_8 {dimension_numbers = #tpu.dot_dimension_numbers<[1], [0], [0], [1], [0, 0, 1, 1], [], []>} : vector<2x128xbf16>, vector<128x128xbf16>, vector<2x128xf32> -> vector<2x128xf32>
    %c1 = arith.constant 1 : index
    %c0_9 = arith.constant 0 : index
    %12 = vector.load %arg2[%c1, %c0_9] : memref<3x128xf32, #tpu.memory_space<vmem>>, vector<1x128xf32>
    %13 = vector.broadcast %12 : vector<1x128xf32> to vector<2x128xf32>
    %14 = arith.addf %11, %13 : vector<2x128xf32>
    %cst_10 = arith.constant 0.000000e+00 : f32
    %15 = vector.broadcast %cst_10 : f32 to vector<2x128xf32>
    %16 = arith.maximumf %14, %15 : vector<2x128xf32>
    %c0_11 = arith.constant 0 : index
    %c0_12 = arith.constant 0 : index
    %17 = vector.load %arg5[%c0_11, %c0_12] : memref<128x8xbf16, #tpu.memory_space<vmem>>, vector<128x8xbf16>
    %18 = arith.truncf %16 : vector<2x128xf32> to vector<2x128xbf16>
    %cst_13 = arith.constant dense<0.000000e+00> : vector<2x8xf32>
    %19 = tpu.matmul %18, %17, %cst_13 {dimension_numbers = #tpu.dot_dimension_numbers<[1], [0], [0], [1], [0, 0, 1, 1], [], []>} : vector<2x128xbf16>, vector<128x8xbf16>, vector<2x8xf32> -> vector<2x8xf32>
    %c2 = arith.constant 2 : index
    %c0_14 = arith.constant 0 : index
    %20 = vector.load %arg2[%c2, %c0_14] : memref<3x128xf32, #tpu.memory_space<vmem>>, vector<1x128xf32>
    %21 = vector.extract_strided_slice %20 {offsets = [0, 0], sizes = [1, 8], strides = [1, 1]} : vector<1x128xf32> to vector<1x8xf32>
    %22 = vector.broadcast %21 : vector<1x8xf32> to vector<2x8xf32>
    %23 = arith.addf %19, %22 : vector<2x8xf32>
    %c0_15 = arith.constant 0 : index
    %c0_16 = arith.constant 0 : index
    %24 = vector.load %arg6[%c0_15, %c0_16] : memref<2x8xf32, #tpu.memory_space<vmem>>, vector<2x8xf32>
    tpu.vector_store %arg6[%c0_15, %c0_16], %23 {strides = array<i32>} : memref<2x8xf32, #tpu.memory_space<vmem>>, vector<2x8xf32>,
    return
  }
  func.func @transform_0(%arg0: i32) -> (i32, i32) {
    %c0_i32 = arith.constant 0 : i32
    %c0_i32_0 = arith.constant 0 : i32
    return %arg0, %c0_i32 : i32, i32
  }
  func.func @transform_1(%arg0: i32) -> (i32, i32) {
    %c0_i32 = arith.constant 0 : i32
    %c0_i32_0 = arith.constant 0 : i32
    %c0_i32_1 = arith.constant 0 : i32
    return %c0_i32, %c0_i32_0 : i32, i32
  }
  func.func @transform_2(%arg0: i32) -> (i32, i32) {
    %c0_i32 = arith.constant 0 : i32
    %c0_i32_0 = arith.constant 0 : i32
    %c0_i32_1 = arith.constant 0 : i32
    return %c0_i32, %c0_i32_0 : i32, i32
  }
  func.func @transform_3(%arg0: i32) -> (i32, i32) {
    %c0_i32 = arith.constant 0 : i32
    %c0_i32_0 = arith.constant 0 : i32
    %c0_i32_1 = arith.constant 0 : i32
    return %c0_i32, %c0_i32_0 : i32, i32
  }
  func.func @transform_4(%arg0: i32) -> (i32, i32) {
    %c0_i32 = arith.constant 0 : i32
    %c0_i32_0 = arith.constant 0 : i32
    %c0_i32_1 = arith.constant 0 : i32
    return %c0_i32, %c0_i32_0 : i32, i32
  }
  func.func @transform_5(%arg0: i32) -> (i32, i32) {
    %c0_i32 = arith.constant 0 : i32
    %c0_i32_0 = arith.constant 0 : i32
    return %arg0, %c0_i32 : i32, i32
  }
}

</mosaic_0001>

<bundles_post_ra>
// kernel: mlp_forward_fused.1
= control target key start
LH: loop header
LB: loop body
LE: loop exit
PB: predicated region body
PF: predicated region fallthrough
CT: control target
= control target key end

     0   :  { %v489_v1 = vmov 0.0   ;;  %vm490_vm0 = vmmov 0   ;;  %vm61_vm1 = vcmask 523264   ;;  %s632_s0 = inlined_call_operand.vmem [shape: f32[2,64], index: 0, kind: input, shape index: {}]   ;;  %s633_s1 = inlined_call_operand.vmem [shape: f32[3,128], index: 1, kind: input, shape index: {}]   ;;  %s634_s2 = inlined_call_operand.vmem [shape: bf16[64,128], index: 2, kind: input, shape index: {}]   ;;  %s635_s3 = inlined_call_operand.vmem [shape: bf16[128,128], index: 3, kind: input, shape index: {}]   ;;  %s636_s4 = inlined_call_operand.vmem [shape: bf16[128,8], index: 4, kind: input, shape index: {}]   ;;  %s637_s5 = inlined_call_operand.hbm [shape: f32[2,8], index: 5, kind: output, shape index: {}]  }
   0x1   :  { %v445_v0 = vld [vmem:[%s634_s2] sm:$0xff]   ;;  %390 = vmatprep.subr.bf16.mxu0 %v489_v1  ;;  %402 = vmatprep.subr.bf16.mxu1 %v489_v1  ;;  %v446_v2 = vld [vmem:[%s634_s2 + $0x8] sm:$0xff]   ;;  %v447_v4 = vld [vmem:[%s634_s2 + $0x10] sm:$0xff]  }
   0x2   :  { %391 = vmatpush3.bf16.msra.mxu0 %v445_v0  ;;  %398 = vmatprep.mubr.msk.bf16.mxu0 %vm490_vm0, %v489_v1  ;;  %v449_v3 = vld [vmem:[%s635_s3] sm:$0xff]   ;;  %v450_v5 = vld [vmem:[%s635_s3 + $0x8] sm:$0xff]   ;;  %v448_v6 = vld [vmem:[%s634_s2 + $0x18] sm:$0xff]  }
   0x3   :  { %392 = vmatprep.subr.bf16.mxu0 %v489_v1  ;;  %418 = vmatprep.mubr.msk.bf16.mxu1 %vm490_vm0, %v489_v1  ;;  %v22_v7 = vld [vmem:[%s632_s0] sm:$0x3]  ;;  %v451_v8 = vld [vmem:[%s635_s3 + $0x10] sm:$0xff]   ;;  %v452_v10 = vld [vmem:[%s635_s3 + $0x18] sm:$0xff]  }
   0x4   :  { %403 = vmatpush3.bf16.msra.mxu1 %v449_v3  ;;  %v31_v9 = vpack.c.bf16 %v22_v7, %v22_v7 }
   0x5   :  { %404 = vmatprep.subr.bf16.mxu1 %v489_v1 }
   0x6   :  { %393 = vmatpush3.bf16.msra.mxu0 %v446_v2 }
   0x7   :  { %394 = vmatprep.subr.bf16.mxu0 %v489_v1 }
   0x8   :  { %405 = vmatpush3.bf16.msra.mxu1 %v450_v5 }
   0x9   :  { %406 = vmatprep.subr.bf16.mxu1 %v489_v1 }
   0xa   :  { %395 = vmatpush3.bf16.msra.mxu0 %v447_v4 }
   0xb   :  { %396 = vmatprep.subr.bf16.mxu0 %v489_v1 }
   0xc   :  { %407 = vmatpush3.bf16.msra.mxu1 %v451_v8 }
   0xd   :  { %408 = vmatprep.subr.bf16.mxu1 %v489_v1 }
   0xe   :  { %397 = vmatpush3.bf16.msra.mxu0 %v448_v6 }
   0xf   :  { %422 = vmatprep.subr.bf16.mxu0 %v489_v1 }
  0x11   :  { %399 = vmatmul.mubr.msk.bf16.vlgmr.msra.gmra.mrb[0].mxu0 %vm61_vm1, %v31_v9 }
  0x12   :  { %10 = vsyncpa [#allocation3], 0  ;;  %438 = vmatprep.mubr.msk.bf16.mxu0 %vm490_vm0, %v489_v1  ;;  %409 = vmatpush3.bf16.msra.mxu1 %v452_v10  ;;  %v453_v11 = vld [vmem:[%s635_s3 + $0x20] sm:$0xff]   ;;  %v454_v12 = vld [vmem:[%s635_s3 + $0x28] sm:$0xff]   ;;  %s491_s11 = smov [#allocation2]   ;;  %vm327_vm2 = vcmask 58368  }
  0x13   :  { %410 = vmatprep.subr.bf16.mxu1 %v489_v1  ;;  %v455_v13 = vld [vmem:[%s635_s3 + $0x30] sm:$0xff]   ;;  %v456_v14 = vld [vmem:[%s635_s3 + $0x38] sm:$0xff]   ;;  %v457_v15 = vld [vmem:[%s636_s4] sm:$0xff]   ;;  %s335_s12 = sshll.u32 %s491_s11, 4  ;;  %s336_s12 = int_to_ptr.vmem [resolvable:$true] %s335_s12 }
  0x14   :  { %423 = vmatpush3.bf16.msra.mxu0 %v457_v15  ;;  %v458_v16 = vld [vmem:[%s636_s4 + $0x8] sm:$0xff]   ;;  %v459_v17 = vld [vmem:[%s636_s4 + $0x10] sm:$0xff]   ;;  %v460_v18 = vld [vmem:[%s636_s4 + $0x18] sm:$0xff]   ;;  %p470_p1 = scmp.lt.s32.totalorder %s336_s12, %s336_s12 }
  0x15   :  { %424 = vmatprep.subr.bf16.mxu0 %v489_v1  ;;  %v461_v19 = vld [vmem:[%s636_s4 + $0x20] sm:$0xff]   ;;  %v462_v20 = vld [vmem:[%s636_s4 + $0x28] sm:$0xff]   ;;  %v463_v29 = vld [vmem:[%s636_s4 + $0x30] sm:$0xff]  }
  0x16   :  { %411 = vmatpush3.bf16.msra.mxu1 %v453_v11  ;;  %v343_v21 = vld [vmem:[%s633_s1] ss:$0 sm:$0xff]  ;;  %v464_v30 = vld [vmem:[%s636_s4 + $0x38] sm:$0xff]   ;;  %v349_v31 = vld [vmem:[%s633_s1 + $0x1] ss:$0 sm:$0xff]  ;;  %s465_s4 = scalar_lea.vmem %s336_s12, 32 }
  0x17   :  { %412 = vmatprep.subr.bf16.mxu1 %v489_v1  ;;  %v358_v39 = vld [vmem:[%s633_s1 + $0x2] ss:$0 sm:$0xff]  ;;  %p466_p0 = scmp.ne.s32.totalorder %s336_s12, %s465_s4  ;;  %p471_p2 = scmp.lt.s32.totalorder %s465_s4, %s465_s4 }
  0x18   :  { %425 = vmatpush3.bf16.msra.mxu0 %v458_v16 }
  0x19   :  { %426 = vmatprep.subr.bf16.mxu0 %v489_v1  ;;  %p472_p3 = por %p471_p2, %p470_p1 }
  0x1a   :  { %413 = vmatpush3.bf16.msra.mxu1 %v454_v12 }
  0x1b   :  { %414 = vmatprep.subr.bf16.mxu1 %v489_v1  ;;  %p473_p4 = pnand %p472_p3, %p466_p0 }
  0x1c   :  { %427 = vmatpush3.bf16.msra.mxu0 %v459_v17 }
  0x1d   :  { %428 = vmatprep.subr.bf16.mxu0 %v489_v1 }
  0x1e   :  { %415 = vmatpush3.bf16.msra.mxu1 %v455_v13 }
  0x1f   :  { %416 = vmatprep.subr.bf16.mxu1 %v489_v1 }
  0x20   :  { %429 = vmatpush3.bf16.msra.mxu0 %v460_v18 }
  0x21   :  { %430 = vmatprep.subr.bf16.mxu0 %v489_v1 }
  0x22   :  { %417 = vmatpush3.bf16.msra.mxu1 %v456_v14 }
  0x24   :  { %431 = vmatpush3.bf16.msra.mxu0 %v461_v19 }
  0x25   :  { %432 = vmatprep.subr.bf16.mxu0 %v489_v1 }
  0x28   :  { %433 = vmatpush3.bf16.msra.mxu0 %v462_v20 }
  0x29   :  { %434 = vmatprep.subr.bf16.mxu0 %v489_v1 }
  0x2c   :  { %435 = vmatpush3.bf16.msra.mxu0 %v463_v29 }
  0x2d   :  { %436 = vmatprep.subr.bf16.mxu0 %v489_v1 }
  0x30   :  { %437 = vmatpush3.bf16.msra.mxu0 %v464_v30 }
  0xe4   :  { %v99_v22 = vpop.f32.mrb[0].mxu0 }
  0xe5   :  { %v100_v23 = vadd.f32 %v343_v21, %v99_v22  ;;  %v400_v24 = vpop.f32.mrb[1].mxu0 }
  0xe6   :  { %v102_v25 = vpop.f32.mrb[2].mxu0 }
  0xe7   :  { %v105_v26 = vmax.f32 %v100_v23, 0.0  ;;  %v401_v27 = vpop.f32.mrb[3].mxu0 }
  0xe9   :  { %v122_v28 = vpack.c.bf16 %v105_v26, %v105_v26 }
  0xeb   :  { %419 = vmatmul.mubr.bf16.vlgmr.msra.gmra.mrb[0].mxu1 %v122_v28 }
 0x1be   :  { %v210_v32 = vpop.f32.mrb[0].mxu1 }
 0x1bf   :  { %v211_v33 = vadd.f32 %v349_v31, %v210_v32  ;;  %v420_v34 = vpop.f32.mrb[1].mxu1 }
 0x1c0   :  { %v213_v35 = vpop.f32.mrb[2].mxu1 }
 0x1c1   :  { %v216_v36 = vmax.f32 %v211_v33, 0.0  ;;  %v421_v37 = vpop.f32.mrb[3].mxu1 }
 0x1c3   :  { %v233_v38 = vpack.c.bf16 %v216_v36, %v216_v36 }
 0x1c5   :  { %439 = vmatmul.mubr.bf16.vlgmr.msra.gmra.mrb[4].mxu0 %v233_v38 }
 0x298   :  { %v321_v40 = vpop.f32.mrb[4].mxu0 }
 0x299   :  { %v322_v41 = vadd.f32 %v358_v39, %v321_v40  ;;  %v440_v42 = vpop.f32.mrb[5].mxu0 }
 0x29a   :  { %v324_v43 = vpop.f32.mrb[6].mxu0 }
 0x29b   :  { %v441_v44 = vpop.f32.mrb[7].mxu0  ;;  %328 = vst.msk [vmem:[#allocation2] sm:$0x3] %vm327_vm2, %v322_v41 }
 0x29c   :  { %476 = shalt.err (!%p473_p4)
}
 0x29d   :  { %s477_s1 = scalar_lea.hbm %s637_s5, 32 }
 0x29e   :  { %p478_p5 = scmp.ne.s32.totalorder %s637_s5, %s477_s1  ;;  %p481_p6 = scmp.lt.u32.totalorder %s477_s1, %s637_s5 }
 0x2a0   :  { %p483_p7 = pnand %p481_p6, %p478_p5 }
 0x2a2   :  { %486 = shalt.err (!%p483_p7)
}
 0x2a3   :  { %338 = dma.vmem_to_hbm [thread:$0]  %s336_s12, 32, %s637_s5, [#allocation3]  }
 0x2a4   :  { %487 = dma.done.wait [#allocation3], 32  }
 0x2a5   :  { %488 = vsyncadd [#allocation3], 4294967264 }
 0x2a6   :  { %342 = vsyncpa [#allocation3], 1 }

</bundles_post_ra>
